<compile_context>
chip_gen: v7x
topology: tpu7x:2x2x1
jax: 0.10.0
libtpu: 0.0.40
codegen_flags: <defaults>
</compile_context>

<pallas_src>
import functools

import jax
import jax.numpy as jnp
from jax.experimental import pallas as pl
from jax.experimental.pallas import tpu as pltpu


def _round_up(x, m):
    return ((x + m - 1) // m) * m


def charcnn_fused_kernel(idx_ref, sel_ref, vrow_ref, w_ref, b_ref, o_ref, *, fp, use_hi):
    """Per grid step (Tb tokens):
         idx_ref : [Tb, L]  int32 char indices
         sel_ref : [L, K]   0/1 selection matrix, K = L*V, col k belongs to word-slot l = k//V
         vrow_ref: [1, K]   f32 constant row, vrow[k] = k % V
         w_ref   : [K, OUT] embedding-folded conv weights (OUT = G*128)
         b_ref   : [1, OUT] bias per (width, position, filter) column
         o_ref   : [Tb, 128] pooled partial result (lanes 0..F-1 hold the answer)
    """
    idx = idx_ref[...]                                           # [Tb, L] int32
    sel = sel_ref[...]                                           # [L, K]  (0/1)
    cdt = sel.dtype

    # Expand idx across lanes with an exact tiny matmul: idx_exp[t, k] = idx[t, k // V].
    # Low/high byte split keeps every operand an exact integer < 256 even under the MXU's
    # bf16 input rounding, so the equality compare below is exact for any vocab size.
    lo = (idx & 0xFF).astype(cdt)
    idx_exp = jnp.dot(lo, sel, preferred_element_type=jnp.float32)          # [Tb, K]
    if use_hi:                                                   # only when V > 256
        hi = (idx >> 8).astype(cdt)
        idx_exp = idx_exp + 256.0 * jnp.dot(hi, sel, preferred_element_type=jnp.float32)

    # One-hot over (word slot, char id): onehot[t, l*V + v] = (idx[t, l] == v).
    onehot = (jnp.abs(idx_exp - vrow_ref[...]) < 0.5).astype(w_ref.dtype)   # [Tb, K]

    # Per 128-column group: MXU matmul, bias + ReLU, running max.  Keeps the live
    # intermediate at [Tb, 128] instead of [Tb, OUT].
    out_cols = w_ref.shape[1]
    g_count = out_cols // 128
    m = None
    for g in range(g_count):                                     # static, unrolled
        yg = jnp.dot(onehot, w_ref[:, g * 128:(g + 1) * 128],
                     preferred_element_type=jnp.float32)         # [Tb, 128]
        yg = jnp.maximum(yg + b_ref[:, g * 128:(g + 1) * 128], 0.0)
        m = yg if m is None else jnp.maximum(m, yg)

    # Finish the max-pool over the 128 // fp slots packed per lane group on the XLU:
    # after this every lane i holds the pooled max for filter (i % fp).
    s = 64
    while s >= fp:
        m = jnp.maximum(m, pltpu.roll(m, s, axis=1))
        s //= 2

    o_ref[...] = m.astype(o_ref.dtype)                           # lane-dense [Tb, 128] store


def _build_fused_params(conv_weights, conv_biases, emb_table, L, E):
    """Fold all Conv1d filters/positions AND the embedding table into one matrix.

    Returns:
      W_comb [L*V, OUT] : column slot (width, position) holds the width-n filter placed at
                          that position with the embedding pre-contracted over E.
      b_big  [1, OUT]   : matching bias row.
      sel    [L, L*V]   : 0/1 lane-expansion matrix (sel[l, k] = (k // V == l)).
      v_row  [1, L*V]   : per-lane char id (k % V), f32.
      FP, spg           : filters padded per slot, slots packed per 128-lane group.
    """
    V = emb_table.shape[0]
    Fd = conv_weights[0].shape[0]
    assert Fd <= 128, "filter_size > 128 not supported by this kernel layout"
    FP = next(d for d in (8, 16, 32, 64, 128) if d >= Fd)
    spg = 128 // FP

    col_blocks, bias_blocks = [], []
    for w, b in zip(conv_weights, conv_biases):
        _, _, n = w.shape                                        # w: [F, L, n] (PyTorch Conv1d)
        P = E - n + 1
        wt = jnp.transpose(w, (1, 2, 0)).astype(jnp.float32)     # [L, n, F]
        for p in range(P):
            blk = jnp.zeros((L, E, FP), jnp.float32)
            blk = blk.at[:, p:p + n, :Fd].set(wt)                # place filter at position p
            col_blocks.append(blk.reshape(L * E, FP))
            bias_blocks.append(jnp.pad(b.astype(jnp.float32), (0, FP - Fd)))

    n_slots = len(col_blocks)
    n_slot_pad = _round_up(n_slots, spg)
    for _ in range(n_slot_pad - n_slots):        # zero slots: relu(0)=0, harmless in the max
        col_blocks.append(jnp.zeros((L * E, FP), jnp.float32))
        bias_blocks.append(jnp.zeros((FP,), jnp.float32))

    W_big = jnp.concatenate(col_blocks, axis=1)                  # [L*E, OUT]
    b_big = jnp.concatenate(bias_blocks).reshape(1, -1)          # [1, OUT]
    OUT = W_big.shape[1]

    # Fold the embedding table: W_comb[l*V + v, col] = sum_e emb[v, e] * W_big[l*E + e, col].
    W_comb = jnp.einsum(
        "ve,leo->lvo", emb_table.astype(jnp.float32), W_big.reshape(L, E, OUT),
        precision=jax.lax.Precision.HIGHEST).reshape(L * V, OUT)

    K = L * V
    k = jnp.arange(K)
    sel = (k[None, :] // V == jnp.arange(L)[:, None]).astype(jnp.float32)   # [L, K]
    v_row = (k % V).astype(jnp.float32).reshape(1, K)                       # [1, K]
    return W_comb, b_big, sel, v_row, FP, spg


def charcnn_forward(sent_as_char_index, emb_table, conv_weights, conv_biases,
                    *, t_blk=1024, mxu_dtype=jnp.bfloat16, out_dtype=jnp.float32):
    """Pallas CharCNN forward. conv_weights[i] is [F, L, n] (PyTorch Conv1d layout).

    mxu_dtype: MXU operand storage dtype (bfloat16 default on all generations; f32 accumulation
               is always used). out_dtype: kernel writeback dtype (bf16 halves HBM writeback).
    """
    S, T, L = sent_as_char_index.shape
    V, E = emb_table.shape
    Fd = conv_weights[0].shape[0]
    N = S * T

    W_comb, b_big, sel, v_row, FP, spg = _build_fused_params(
        conv_weights, conv_biases, emb_table, L, E)
    K, OUT = W_comb.shape
    W_comb = W_comb.astype(mxu_dtype)
    sel = sel.astype(mxu_dtype)

    idx = sent_as_char_index.reshape(N, L).astype(jnp.int32)     # 64 B/token kernel input

    # Token tiling: 16-row multiple (safe for bf16 writeback too); cap t_blk so there are at
    # least 2 grid steps when N allows (keeps both v7x TensorCores busy); even step count.
    row_mult = 16
    t_blk = max(row_mult, _round_up(min(t_blk, 1 << 16), row_mult))
    cap = max(row_mult, _round_up((N + 1) // 2, row_mult))
    t_blk = min(t_blk, cap)
    steps = -(-N // t_blk)
    if steps > 1 and steps % 2 == 1:
        steps += 1
    n_pad = steps * t_blk
    if n_pad != N:
        idx = jnp.pad(idx, ((0, n_pad - N), (0, 0)))             # pad rows sliced off below

    kernel = functools.partial(charcnn_fused_kernel, fp=FP, use_hi=(V > 256))

    out_isize = jnp.dtype(out_dtype).itemsize
    mxu_isize = jnp.dtype(mxu_dtype).itemsize
    cost = pl.CostEstimate(
        flops=2 * n_pad * K * OUT + 2 * n_pad * L * K,
        transcendentals=0,
        bytes_accessed=int(n_pad * L * 4 + n_pad * 128 * out_isize
                           + (K * OUT + L * K) * mxu_isize + (OUT + K) * 4),
    )

    m = pl.pallas_call(
        kernel,
        out_shape=jax.ShapeDtypeStruct((n_pad, 128), out_dtype),
        grid=(steps,),
        in_specs=[
            pl.BlockSpec((t_blk, L), lambda i: (i, 0)),          # int32 indices (lane-padded)
            pl.BlockSpec((L, K), lambda i: (0, 0)),              # selection matrix (resident)
            pl.BlockSpec((1, K), lambda i: (0, 0)),              # per-lane char id row
            pl.BlockSpec((K, OUT), lambda i: (0, 0)),            # fused emb+conv weights
            pl.BlockSpec((1, OUT), lambda i: (0, 0)),            # fused bias
        ],
        out_specs=pl.BlockSpec((t_blk, 128), lambda i: (i, 0)),  # lane-dense stores
        compiler_params=pltpu.CompilerParams(dimension_semantics=("parallel",)),
        cost_estimate=cost,
    )(idx, sel, v_row, W_comb, b_big)

    # Epilogue: the pooled value for filter f already sits in lane f; just slice + reshape.
    return m[:N, :Fd].astype(jnp.float32).reshape(S, T, Fd)


def charcnn_reference(sent_as_char_index, emb_table, conv_weights, conv_biases):
    """Pure-JAX reference mirroring the PyTorch forward exactly."""
    S, T, L = sent_as_char_index.shape
    x = jnp.take(emb_table, sent_as_char_index.reshape(S * T, L), axis=0)  # [N, L, E]
    outs = []
    for w, b in zip(conv_weights, conv_biases):
        y = jax.lax.conv_general_dilated(
            x, w, window_strides=(1,), padding="VALID",
            dimension_numbers=("NCH", "OIH", "NCH"))                       # [N, F, E-n+1]
        outs.append(jax.nn.relu(y + b[None, :, None]))
    cat = jnp.concatenate(outs, axis=2)
    pooled = jnp.max(cat, axis=2)                                          # global max-pool
    return pooled.reshape(S, T, -1)


if __name__ == "__main__":
    # Module hyperparameters (small, consistent with the PyTorch __init__):
    filter_size = 32            # F
    filter_widths = (3, 4, 5)   # kernel sizes
    char_dict_len = 15          # vocab = len(char_dict) + 1 = 16 (row 0 is padding)
    char_embedding_size = 8     # E (Conv1d "length" dim)
    max_word_length = 16        # L (Conv1d in_channels)
    num_sents, max_sent_length = 3, 17   # N = 51 -> exercises token padding + a 2-step grid

    V = char_dict_len + 1

    key = jax.random.PRNGKey(0)
    keys = jax.random.split(key, 2 + 2 * len(filter_widths))
    k_emb, k_idx = keys[0], keys[1]

    # Deterministic parameter init (synthetic; no checkpoint load).
    emb_table = 0.1 * jax.random.normal(k_emb, (V, char_embedding_size), jnp.float32)
    emb_table = emb_table.at[0].set(0.0)   # padding_idx=0

    conv_weights, conv_biases = [], []
    for i, n in enumerate(filter_widths):
        kw, kb = keys[2 + 2 * i], keys[3 + 2 * i]
        fan_in = max_word_length * n
        w = jax.random.normal(kw, (filter_size, max_word_length, n), jnp.float32) / jnp.sqrt(
            jnp.float32(fan_in))
        b = 0.01 * jax.random.normal(kb, (filter_size,), jnp.float32)
        conv_weights.append(w)
        conv_biases.append(b)

    sent_as_char_index = jax.random.randint(
        k_idx, (num_sents, max_sent_length, max_word_length), 0, V, dtype=jnp.int32)

    ref = jax.block_until_ready(
        charcnn_reference(sent_as_char_index, emb_table, conv_weights, conv_biases))

    # Default (performance) path: bf16 MXU operands, f32 accumulation.
    out_bf16 = jax.block_until_ready(
        charcnn_forward(sent_as_char_index, emb_table, conv_weights, conv_biases))
    assert out_bf16.shape == (num_sents, max_sent_length, filter_size), out_bf16.shape
    if not jnp.allclose(out_bf16, ref, atol=2e-2, rtol=2e-2):
        raise AssertionError(
            f"bf16 path mismatch, max abs err = {jnp.max(jnp.abs(out_bf16 - ref))}")

    # f32-operand path for a tighter numerical check (MXU still applies its default rounding).
    out_f32 = jax.block_until_ready(
        charcnn_forward(sent_as_char_index, emb_table, conv_weights, conv_biases,
                        mxu_dtype=jnp.float32))
    if not jnp.allclose(out_f32, ref, atol=5e-3, rtol=5e-3):
        raise AssertionError(
            f"f32 path mismatch, max abs err = {jnp.max(jnp.abs(out_f32 - ref))}")

    print("KERNEL_OK")
</pallas_src>

<mosaic_0001>
module attributes {stable_mosaic.version = 11 : i64} {
  func.func @charcnn_fused_kernel(%arg0: i32, %arg1: memref<32x16xi32, #tpu.memory_space<vmem>>, %arg2: memref<16x256xbf16, #tpu.memory_space<vmem>>, %arg3: memref<1x256xf32, #tpu.memory_space<vmem>>, %arg4: memref<256x512xbf16, #tpu.memory_space<vmem>>, %arg5: memref<1x512xf32, #tpu.memory_space<vmem>>, %arg6: memref<32x128xf32, #tpu.memory_space<vmem>>) attributes {dimension_semantics = [#tpu.dimension_semantics<parallel>], iteration_bounds = array<i64: 2>, scalar_prefetch = 0 : i64, scratch_operands = 0 : i64, tpu.core_type = #tpu.core_type<tc>, window_params = [{transform_indices = @transform_0, window_bounds = array<i64: 32, 16>}, {pipeline_mode = #tpu.pipeline_mode<synchronous>, transform_indices = @transform_1, window_bounds = array<i64: 16, 256>}, {pipeline_mode = #tpu.pipeline_mode<synchronous>, transform_indices = @transform_2, window_bounds = array<i64: 1, 256>}, {pipeline_mode = #tpu.pipeline_mode<synchronous>, transform_indices = @transform_3, window_bounds = array<i64: 256, 512>}, {pipeline_mode = #tpu.pipeline_mode<synchronous>, transform_indices = @transform_4, window_bounds = array<i64: 1, 512>}, {transform_indices = @transform_5, window_bounds = array<i64: 32, 128>}]} {
    %c0 = arith.constant 0 : index
    %c0_0 = arith.constant 0 : index
    %0 = vector.load %arg1[%c0, %c0_0] : memref<32x16xi32, #tpu.memory_space<vmem>>, vector<32x16xi32>
    %c0_1 = arith.constant 0 : index
    %c0_2 = arith.constant 0 : index
    %1 = vector.load %arg2[%c0_1, %c0_2] : memref<16x256xbf16, #tpu.memory_space<vmem>>, vector<16x256xbf16>
    %c255_i32 = arith.constant 255 : i32
    %2 = vector.broadcast %c255_i32 : i32 to vector<32x16xi32>
    %3 = arith.andi %0, %2 : vector<32x16xi32>
    %4 = arith.sitofp %3 : vector<32x16xi32> to vector<32x16xbf16>
    %cst = arith.constant dense<0.000000e+00> : vector<32x256xf32>
    %5 = tpu.matmul %4, %1, %cst {dimension_numbers = #tpu.dot_dimension_numbers<[1], [0], [0], [1], [0, 0, 1, 1], [], []>} : vector<32x16xbf16>, vector<16x256xbf16>, vector<32x256xf32> -> vector<32x256xf32>
    %c0_3 = arith.constant 0 : index
    %c0_4 = arith.constant 0 : index
    %6 = vector.load %arg3[%c0_3, %c0_4] : memref<1x256xf32, #tpu.memory_space<vmem>>, vector<1x256xf32>
    %7 = vector.broadcast %6 : vector<1x256xf32> to vector<32x256xf32>
    %8 = arith.subf %5, %7 : vector<32x256xf32>
    %9 = math.absf %8 : vector<32x256xf32>
    %cst_5 = arith.constant 5.000000e-01 : f32
    %10 = vector.broadcast %cst_5 : f32 to vector<32x256xf32>
    %11 = arith.cmpf olt, %9, %10 : vector<32x256xf32>
    %12 = arith.extui %11 : vector<32x256xi1> to vector<32x256xi32>
    %13 = arith.sitofp %12 : vector<32x256xi32> to vector<32x256xf32>
    %14 = arith.truncf %13 : vector<32x256xf32> to vector<32x256xbf16>
    %c0_6 = arith.constant 0 : index
    %c0_7 = arith.constant 0 : index
    %15 = vector.load %arg4[%c0_6, %c0_7] : memref<256x512xbf16, #tpu.memory_space<vmem>>, vector<256x128xbf16>
    %cst_8 = arith.constant dense<0.000000e+00> : vector<32x128xf32>
    %16 = tpu.matmul %14, %15, %cst_8 {dimension_numbers = #tpu.dot_dimension_numbers<[1], [0], [0], [1], [0, 0, 1, 1], [], []>} : vector<32x256xbf16>, vector<256x128xbf16>, vector<32x128xf32> -> vector<32x128xf32>
    %c0_9 = arith.constant 0 : index
    %c0_10 = arith.constant 0 : index
    %17 = vector.load %arg5[%c0_9, %c0_10] : memref<1x512xf32, #tpu.memory_space<vmem>>, vector<1x128xf32>
    %18 = vector.broadcast %17 : vector<1x128xf32> to vector<32x128xf32>
    %19 = arith.addf %16, %18 : vector<32x128xf32>
    %cst_11 = arith.constant 0.000000e+00 : f32
    %20 = vector.broadcast %cst_11 : f32 to vector<32x128xf32>
    %21 = arith.maximumf %19, %20 : vector<32x128xf32>
    %c0_12 = arith.constant 0 : index
    %c128 = arith.constant 128 : index
    %22 = vector.load %arg4[%c0_12, %c128] : memref<256x512xbf16, #tpu.memory_space<vmem>>, vector<256x128xbf16>
    %cst_13 = arith.constant dense<0.000000e+00> : vector<32x128xf32>
    %23 = tpu.matmul %14, %22, %cst_13 {dimension_numbers = #tpu.dot_dimension_numbers<[1], [0], [0], [1], [0, 0, 1, 1], [], []>} : vector<32x256xbf16>, vector<256x128xbf16>, vector<32x128xf32> -> vector<32x128xf32>
    %c0_14 = arith.constant 0 : index
    %c128_15 = arith.constant 128 : index
    %24 = vector.load %arg5[%c0_14, %c128_15] : memref<1x512xf32, #tpu.memory_space<vmem>>, vector<1x128xf32>
    %25 = vector.broadcast %24 : vector<1x128xf32> to vector<32x128xf32>
    %26 = arith.addf %23, %25 : vector<32x128xf32>
    %cst_16 = arith.constant 0.000000e+00 : f32
    %27 = vector.broadcast %cst_16 : f32 to vector<32x128xf32>
    %28 = arith.maximumf %26, %27 : vector<32x128xf32>
    %29 = arith.maximumf %21, %28 : vector<32x128xf32>
    %c0_17 = arith.constant 0 : index
    %c256 = arith.constant 256 : index
    %30 = vector.load %arg4[%c0_17, %c256] : memref<256x512xbf16, #tpu.memory_space<vmem>>, vector<256x128xbf16>
    %cst_18 = arith.constant dense<0.000000e+00> : vector<32x128xf32>
    %31 = tpu.matmul %14, %30, %cst_18 {dimension_numbers = #tpu.dot_dimension_numbers<[1], [0], [0], [1], [0, 0, 1, 1], [], []>} : vector<32x256xbf16>, vector<256x128xbf16>, vector<32x128xf32> -> vector<32x128xf32>
    %c0_19 = arith.constant 0 : index
    %c256_20 = arith.constant 256 : index
    %32 = vector.load %arg5[%c0_19, %c256_20] : memref<1x512xf32, #tpu.memory_space<vmem>>, vector<1x128xf32>
    %33 = vector.broadcast %32 : vector<1x128xf32> to vector<32x128xf32>
    %34 = arith.addf %31, %33 : vector<32x128xf32>
    %cst_21 = arith.constant 0.000000e+00 : f32
    %35 = vector.broadcast %cst_21 : f32 to vector<32x128xf32>
    %36 = arith.maximumf %34, %35 : vector<32x128xf32>
    %37 = arith.maximumf %29, %36 : vector<32x128xf32>
    %c0_22 = arith.constant 0 : index
    %c384 = arith.constant 384 : index
    %38 = vector.load %arg4[%c0_22, %c384] : memref<256x512xbf16, #tpu.memory_space<vmem>>, vector<256x128xbf16>
    %cst_23 = arith.constant dense<0.000000e+00> : vector<32x128xf32>
    %39 = tpu.matmul %14, %38, %cst_23 {dimension_numbers = #tpu.dot_dimension_numbers<[1], [0], [0], [1], [0, 0, 1, 1], [], []>} : vector<32x256xbf16>, vector<256x128xbf16>, vector<32x128xf32> -> vector<32x128xf32>
    %c0_24 = arith.constant 0 : index
    %c384_25 = arith.constant 384 : index
    %40 = vector.load %arg5[%c0_24, %c384_25] : memref<1x512xf32, #tpu.memory_space<vmem>>, vector<1x128xf32>
    %41 = vector.broadcast %40 : vector<1x128xf32> to vector<32x128xf32>
    %42 = arith.addf %39, %41 : vector<32x128xf32>
    %cst_26 = arith.constant 0.000000e+00 : f32
    %43 = vector.broadcast %cst_26 : f32 to vector<32x128xf32>
    %44 = arith.maximumf %42, %43 : vector<32x128xf32>
    %45 = arith.maximumf %37, %44 : vector<32x128xf32>
    %c64_i32 = arith.constant 64 : i32
    %46 = tpu.dynamic_rotate %45 by %c64_i32 dim 1 : vector<32x128xf32>, i32 -> vector<32x128xf32>
    %47 = arith.maximumf %45, %46 : vector<32x128xf32>
    %c32_i32 = arith.constant 32 : i32
    %48 = tpu.dynamic_rotate %47 by %c32_i32 dim 1 : vector<32x128xf32>, i32 -> vector<32x128xf32>
    %49 = arith.maximumf %47, %48 : vector<32x128xf32>
    %c0_27 = arith.constant 0 : index
    %c0_28 = arith.constant 0 : index
    %50 = vector.load %arg6[%c0_27, %c0_28] : memref<32x128xf32, #tpu.memory_space<vmem>>, vector<32x128xf32>
    tpu.vector_store %arg6[%c0_27, %c0_28], %49 {strides = array<i32>} : memref<32x128xf32, #tpu.memory_space<vmem>>, vector<32x128xf32>,
    return
  }
  func.func @transform_0(%arg0: i32) -> (i32, i32) {
    %c0_i32 = arith.constant 0 : i32
    %c0_i32_0 = arith.constant 0 : i32
    return %arg0, %c0_i32 : i32, i32
  }
  func.func @transform_1(%arg0: i32) -> (i32, i32) {
    %c0_i32 = arith.constant 0 : i32
    %c0_i32_0 = arith.constant 0 : i32
    %c0_i32_1 = arith.constant 0 : i32
    return %c0_i32, %c0_i32_0 : i32, i32
  }
  func.func @transform_2(%arg0: i32) -> (i32, i32) {
    %c0_i32 = arith.constant 0 : i32
    %c0_i32_0 = arith.constant 0 : i32
    %c0_i32_1 = arith.constant 0 : i32
    return %c0_i32, %c0_i32_0 : i32, i32
  }
  func.func @transform_3(%arg0: i32) -> (i32, i32) {
    %c0_i32 = arith.constant 0 : i32
    %c0_i32_0 = arith.constant 0 : i32
    %c0_i32_1 = arith.constant 0 : i32
    return %c0_i32, %c0_i32_0 : i32, i32
  }
  func.func @transform_4(%arg0: i32) -> (i32, i32) {
    %c0_i32 = arith.constant 0 : i32
    %c0_i32_0 = arith.constant 0 : i32
    %c0_i32_1 = arith.constant 0 : i32
    return %c0_i32, %c0_i32_0 : i32, i32
  }
  func.func @transform_5(%arg0: i32) -> (i32, i32) {
    %c0_i32 = arith.constant 0 : i32
    %c0_i32_0 = arith.constant 0 : i32
    return %arg0, %c0_i32 : i32, i32
  }
}

</mosaic_0001>

<bundles_post_ra>
// kernel: tpu_custom_call.1
= control target key start
LH: loop header
LB: loop body
LE: loop exit
PB: predicated region body
PF: predicated region fallthrough
CT: control target
= control target key end

     0   :  { %10 = vsyncpa [#allocation3], 0  ;;  %s1988_s0 = inlined_call_operand.vmem [shape: s32[64,16], index: 0, kind: input, shape index: {}]   ;;  %s1989_s1 = inlined_call_operand.vmem [shape: bf16[16,256], index: 1, kind: input, shape index: {}]   ;;  %s1990_s2 = inlined_call_operand.vmem [shape: f32[1,256], index: 2, kind: input, shape index: {}]   ;;  %s1991_s3 = inlined_call_operand.hbm [shape: bf16[256,512], index: 3, kind: input, shape index: {}]   ;;  %s1992_s4 = inlined_call_operand.vmem [shape: f32[1,512], index: 4, kind: input, shape index: {}]   ;;  %s1993_s5 = inlined_call_operand.hbm [shape: f32[64,128], index: 5, kind: output, shape index: {}]  }
   0x1   :  { %11 = vsyncpa [#allocation4], 0 }
   0x2   :  { %13 = vsyncpa [#allocation4 + $0x1], 0  ;;  %s1764_s18 = smov 0   ;;  %s1766_s19 = smov 0  }
   0x3   :  { %s1768_s20 = smov 0   ;;  %s1770_s21 = smov 0  }
   0x4 LB: > { %s1785_s22 = sadd.s32 4294967295, %s1722_s21   ;;  %s1264_s23 = sadd.s32 4294967294, %s1722_s21   ;;  %s1722_s21 = sphi %s1770_s21, %s2017_s21   ;;  %s1718_s20 = sphi %s1768_s20, %s2016_s20   ;;  %s1714_s19 = sphi %s1766_s19, %s2015_s19   ;;  %s1710_s18 = sphi %s1764_s18, %s2014_s18  }
   0x5   : > { %s1789_s24 = sadd.s32 1, %s1722_s21   ;;  %s136_s25 = sadd.s32 1, %s1718_s20 }
   0x6   : > { %s133_s26 = ssub.s32 %s1722_s21, %s1789_s24  ;;  %p146_p0 = scmp.ne.s32.totalorder %s1718_s20, %s1714_s19 }
   0x7   : > { %p134_p1 = scmp.eq.s32.totalorder %s133_s26, 0  ;;  %p147_p2 = scmp.eq.s32.totalorder %s1785_s22, 1 }
   0x8   : > { %p152_p3 = scmp.ne.s32.totalorder %s1714_s19, %s1710_s18  ;;  %p153_p4 = scmp.eq.s32.totalorder %s1264_s23, 1 }
   0x9   : > { %s1800_s27 = scalar_select %p134_p1, %s1718_s20, %s136_s25  }
   0xa   : > { %p1802_p5 = por %p147_p2, %p146_p0  ;;  %p1806_p6 = por %p153_p4, %p152_p3 }
   0xb   : > { %p1265_p7 = scmp.ge.s32.totalorder %s1722_s21, 1  ;;  %p160_p8 = scmp.lt.s32.totalorder %s1722_s21, 3 }
   0xc   : > { %s1997_s28 = scalar_select %p1802_p5, 1, 0 }
   0xd   : > { %s1998_s29 = scalar_select %p1806_p6, 1, 0 }
   0xe   : > { %p1994_p9 = scmp.eq.s32.totalorder %s1785_s22, 0  ;;  %p1813_p10 = pnand %p1265_p7, %p160_p8 }
   0xf   : > { %s1724_s6 = smov [#allocation2]   ;;  %s1628_s11 = scalar_lea.hbm %s1991_s3, 8192 }
  0x10   : > { %s1999_s30 = scalar_select %p1813_p10, 1, 0 }
  0x11   : > { %s178_s7 = sshll.u32 %s1724_s6, 4  ;;  %p1509_p11 = pneg %p1813_p10  ;;  %s179_s7 = int_to_ptr.vmem [resolvable:$true] %s178_s7 }
  0x12   : > { %p1629_p13 = scmp.ne.s32.totalorder %s1991_s3, %s1628_s11  ;;  %p1635_p3 = scmp.lt.u32.totalorder %s1628_s11, %s1991_s3 }
  0x13   : > { %p1821_p12 = pnand %p1994_p9, %p1509_p11 }
  0x15   : > { %p1630_p0 = pneg %p1821_p12 }
  0x17   : > { %p1631_p1 = pnand %p1630_p0, %p1629_p13 }
  0x19   : > { %p1632_p2 = pneg %p1631_p1 }
  0x1b   : > { %p1637_p4 = pnand %p1635_p3, %p1632_p2 }
  0x1d   : > { %1640 = shalt.err (!%p1637_p4)
}
  0x1e   : > { %s1641_s16 = scalar_lea.vmem %s179_s7, 8192  ;;  %p1649_p9 = scmp.lt.s32.totalorder %s179_s7, %s179_s7 }
  0x1f   : > { %p1642_p7 = scmp.ne.s32.totalorder %s179_s7, %s1641_s16  ;;  %p1650_p6 = scmp.lt.s32.totalorder %s1641_s16, %s1641_s16 }
  0x21   : > { %p1644_p8 = pnand %p1642_p7, %p1630_p0  ;;  %p1651_p5 = por %p1650_p6, %p1649_p9 }
  0x23   : > { %p1645_p11 = pneg %p1644_p8 }
  0x25   : > { %p1652_p10 = pnand %p1651_p5, %p1645_p11 }
  0x27   : > { %1655 = shalt.err (!%p1652_p10)
}
  0x28   : > { %s1725_s17 = smov 256   ;;  %s1726_s23 = smov 16  }
  0x29   : > { %1512 = dma.hbm_to_vmem [thread:$0]  (!%p1821_p12), %s1991_s3, 8192, %s179_s7, [#allocation3], %s1725_s17, %s1725_s17, %s1726_s23  }
  0x2a   : > { %p2001_p13 = scmp.ne.s32.totalorder %s1999_s30, 0 }
  0x2b   : > { %p2002_p1 = scmp.eq.s32.totalorder (!%p2001_p13), %s1785_s22, 0 }
  0x2c   : > { %206 = sbr.rel (%p2001_p13) target bundleno = 803 (0x323), region = 40 }
  0x33   : > { %1701 = dma.done.wait (%p2002_p1), [#allocation3], 8192   ;;  %p2003_p0 = pmov %p2002_p1 }
  0x34   : > { %s1271_s6 = sshll.u32 %s1785_s22, 2  ;;  %v1727_v0 = vmov 0   ;;  %v1561_v1 = vld [vmem:[%s1989_s1 + $0x4] ss:$8 sps:$4 sm:$0xff]   ;;  %v1563_v2 = vld [vmem:[%s1989_s1] ss:$8 sps:$4 sm:$0xff]   ;;  %v330_v51 = vlaneseq }
  0x35   : > { %1703 = vsyncadd (%p2003_p0), [#allocation3], 4294959104  ;;  %307 = vmatprep.mubr.bf16.mxu0 %v1727_v0  ;;  %p235_p5 = scmp.lt.s32.totalorder %s1271_s6, 7  ;;  %vm268_vm0 = vcmask 130048   ;;  %275 = vmatprep.subr.bf16.mxu0 %v1561_v1  ;;  %v1564_v11 = vld [vmem:[#allocation2 + $0x100] ss:$16 sps:$4 sm:$0xff]  }
  0x36   : > { %276 = vmatpush1.bf16.msra.mxu0 %v1563_v2  ;;  %v1565_v14 = vld [vmem:[#allocation2 + $0x104] ss:$16 sps:$4 sm:$0xff]   ;;  %1391 = vmatprep.subr.bf16.mxu1 %v1564_v11  ;;  %v1566_v15 = vld [vmem:[#allocation2] ss:$16 sps:$4 sm:$0xff]   ;;  %v1596_v49 = vld [vmem:[#allocation2 + $0x108] ss:$16 sps:$4 sm:$0xff]  }
  0x37   : > { %s2019_s6 = smov (!%p235_p5, %s1271_s6), 7  ;;  %1419 = vmatprep.subr.bf16.mxu0 %v1565_v14  ;;  %v1567_v17 = vld [vmem:[#allocation2 + $0x4] ss:$16 sps:$4 sm:$0xff]   ;;  %1392 = vmatpush3.bf16.msra.mxu1 %v1566_v15  ;;  %v1568_v18 = vld [vmem:[#allocation2 + $0x120] ss:$16 sps:$4 sm:$0xff]   ;;  %v331_v52 = vshrl.u32 %v330_v51, 7 }
  0x38   : > { %s1272_s8 = sshll.u32 %s2019_s6, 3  ;;  %v1569_v21 = vld [vmem:[#allocation2 + $0x124] ss:$16 sps:$4 sm:$0xff]   ;;  %v1570_v22 = vld [vmem:[#allocation2 + $0x20] ss:$16 sps:$4 sm:$0xff]   ;;  %1393 = vmatprep.subr.bf16.mxu1 %v1568_v18  ;;  %s1729_s10 = smov 64  }
  0x39   : > { %s238_s7 = scalar_lea.vmem %s1988_s0, %s1272_s8  ;;  %v1571_v23 = vld [vmem:[#allocation2 + $0x24] ss:$16 sps:$4 sm:$0xff]   ;;  %v1572_v24 = vld [vmem:[#allocation2 + $0x140] ss:$16 sps:$4 sm:$0xff]   ;;  %v1597_v50 = vld [vmem:[#allocation2 + $0x10c] ss:$16 sps:$4 sm:$0xff]  }
  0x3a   : > { %v242_v3 = vld [vmem:[%s238_s7] sm:$0xff]  ;;  %v243_v4 = vld [vmem:[%s238_s7 + $0x8] sm:$0xff]  ;;  %v244_v7 = vld [vmem:[%s238_s7 + $0x10] sm:$0xff]  ;;  %v332_v53 = vsub.s32 0, %v331_v52  ;;  %v336_v55 = vsub.s32 1, %v331_v52  ;;  %s231_s11 = sand.u32 1, %s1714_s19  }
  0x3b   : > { %v248_v5 = vand.u32 255, %v242_v3  ;;  %v249_v6 = vand.u32 255, %v243_v4  ;;  %v245_v8 = vld [vmem:[%s238_s7 + $0x18] sm:$0xff]  ;;  %v250_v9 = vand.u32 255, %v244_v7  ;;  %1394 = vmatpush3.bf16.msra.mxu1 %v1570_v22  ;;  %v1573_v26 = vld [vmem:[#allocation2 + $0x144] ss:$16 sps:$4 sm:$0xff]  }
  0x3c   : > { %v251_v10 = vand.u32 255, %v245_v8  ;;  %1395 = vmatprep.subr.bf16.mxu1 %v1572_v24  ;;  %v1574_v27 = vld [vmem:[#allocation2 + $0x40] ss:$16 sps:$4 sm:$0xff]   ;;  %v1575_v28 = vld [vmem:[#allocation2 + $0x44] ss:$16 sps:$4 sm:$0xff]   ;;  %s1730_s7 = smov 32  }
  0x3d   : > { %v252_v12 = vcvt.s32.f32 %v248_v5  ;;  %v253_v13 = vcvt.s32.f32 %v249_v6  ;;  %v254_v19 = vcvt.s32.f32 %v250_v9  ;;  %v1576_v29 = vld [vmem:[#allocation2 + $0x160] ss:$16 sps:$4 sm:$0xff]   ;;  %v1577_v30 = vld [vmem:[#allocation2 + $0x164] ss:$16 sps:$4 sm:$0xff]   ;;  %v1598_v6 = vld [vmem:[#allocation2 + $0x8] ss:$16 sps:$4 sm:$0xff]  }
  0x3e   : > { %v255_v20 = vcvt.s32.f32 %v251_v10  ;;  %v1578_v31 = vld [vmem:[#allocation2 + $0x60] ss:$16 sps:$4 sm:$0xff]   ;;  %v1579_v32 = vld [vmem:[#allocation2 + $0x64] ss:$16 sps:$4 sm:$0xff]   ;;  %v1599_v9 = vld [vmem:[#allocation2 + $0xc] ss:$16 sps:$4 sm:$0xff]  }
  0x3f   : > { %v256_v16 = vpack.c.bf16 %v253_v13, %v252_v12  ;;  %1396 = vmatpush3.bf16.msra.mxu1 %v1574_v27  ;;  %v1580_v33 = vld [vmem:[#allocation2 + $0x180] ss:$16 sps:$4 sm:$0xff]   ;;  %v1581_v34 = vld [vmem:[#allocation2 + $0x184] ss:$16 sps:$4 sm:$0xff]   ;;  %v1600_v13 = vld [vmem:[#allocation2 + $0x128] ss:$16 sps:$4 sm:$0xff]  }
  0x40   : > { %v257_v25 = vpack.c.bf16 %v255_v20, %v254_v19  ;;  %1397 = vmatprep.subr.bf16.mxu1 %v1576_v29  ;;  %v1582_v35 = vld [vmem:[#allocation2 + $0x80] ss:$16 sps:$4 sm:$0xff]   ;;  %v1583_v36 = vld [vmem:[#allocation2 + $0x84] ss:$16 sps:$4 sm:$0xff]   ;;  %v1601_v14 = vld [vmem:[#allocation2 + $0x12c] ss:$16 sps:$4 sm:$0xff]  }
  0x41   : > { %1275 = vmatmul.mubr.msk.bf16.vlgmr.msra.gmra.mrb[0].mxu0 %vm268_vm0, %v256_v16  ;;  %v1584_v37 = vld [vmem:[#allocation2 + $0x1a0] ss:$16 sps:$4 sm:$0xff]   ;;  %v1585_v38 = vld [vmem:[#allocation2 + $0x1a4] ss:$16 sps:$4 sm:$0xff]   ;;  %v1603_v24 = vld [vmem:[#allocation2 + $0x2c] ss:$16 sps:$4 sm:$0xff]  }
  0x42   : > { %317 = vmatprep.mubr.bf16.mxu0 %v1727_v0  ;;  %1420 = vmatpush3.bf16.msra.mxu0 %v1567_v17  ;;  %v1586_v39 = vld [vmem:[#allocation2 + $0xa0] ss:$16 sps:$4 sm:$0xff]   ;;  %v1587_v40 = vld [vmem:[#allocation2 + $0xa4] ss:$16 sps:$4 sm:$0xff]   ;;  %v1728_v17 = vmov 1.0|1.0  }
  0x43   : > { %1421 = vmatprep.subr.bf16.mxu0 %v1569_v21  ;;  %1398 = vmatpush3.bf16.msra.mxu1 %v1578_v31  ;;  %v1588_v41 = vld [vmem:[#allocation2 + $0x1c0] ss:$16 sps:$4 sm:$0xff]   ;;  %v1589_v42 = vld [vmem:[#allocation2 + $0x1c4] ss:$16 sps:$4 sm:$0xff]   ;;  %v1602_v21 = vld [vmem:[#allocation2 + $0x28] ss:$16 sps:$4 sm:$0xff]  }
  0x44   : > { %1399 = vmatprep.subr.bf16.mxu1 %v1580_v33  ;;  %v1590_v43 = vld [vmem:[#allocation2 + $0xc0] ss:$16 sps:$4 sm:$0xff]   ;;  %v1591_v44 = vld [vmem:[#allocation2 + $0xc4] ss:$16 sps:$4 sm:$0xff]   ;;  %v1605_v27 = vld [vmem:[#allocation2 + $0x14c] ss:$16 sps:$4 sm:$0xff]  }
  0x45   : > { %v1592_v45 = vld [vmem:[#allocation2 + $0x1e0] ss:$16 sps:$4 sm:$0xff]   ;;  %v1593_v46 = vld [vmem:[#allocation2 + $0x1e4] ss:$16 sps:$4 sm:$0xff]   ;;  %v1607_v31 = vld [vmem:[#allocation2 + $0x4c] ss:$16 sps:$4 sm:$0xff]  }
  0x46   : > { %1422 = vmatpush3.bf16.msra.mxu0 %v1571_v23  ;;  %v1594_v47 = vld [vmem:[#allocation2 + $0xe0] ss:$16 sps:$4 sm:$0xff]   ;;  %v1595_v48 = vld [vmem:[#allocation2 + $0xe4] ss:$16 sps:$4 sm:$0xff]   ;;  %v1608_v33 = vld [vmem:[#allocation2 + $0x168] ss:$16 sps:$4 sm:$0xff]  }
  0x47   : > { %1423 = vmatprep.subr.bf16.mxu0 %v1573_v26  ;;  %1400 = vmatpush3.bf16.msra.mxu1 %v1582_v35  ;;  %v328_v54 = vld [vmem:[%s1990_s2] sm:$0x3]  ;;  %v1610_v35 = vld [vmem:[#allocation2 + $0x68] ss:$16 sps:$4 sm:$0xff]   ;;  %v1627_v52 = vld [vmem:[#allocation2 + $0xec] ss:$16 sps:$4 sm:$0xff]  }
  0x48   : > { %1401 = vmatprep.subr.bf16.mxu1 %v1584_v37  ;;  %v333_v56 = vrot.slane %v328_v54, %v332_v53  ;;  %v337_v57 = vrot.slane %v328_v54, %v336_v55  ;;  %v1612_v37 = vld [vmem:[#allocation2 + $0x188] ss:$16 sps:$4 sm:$0xff]   ;;  %v1285_v55 = vld [vmem:[%s1992_s4] ss:$0 sm:$0xff]  ;;  %s1270_s30 = sshll.u32 %s231_s11, 5  ;;  %s1390_s14 = sshll.u32 %s1785_s22, 9 }
  0x49   : > { %1276 = vmatmul.mubr.msk.bf16.gmra.mrb[4].mxu0 %vm268_vm0, %v257_v25  ;;  %v1604_v25 = vld [vmem:[#allocation2 + $0x148] ss:$16 sps:$4 sm:$0xff]   ;;  %s233_s12 = scalar_lea.vmem [#allocation5], %s1270_s30  ;;  %s1945_s17 = scalar_lea.hbm %s1993_s5, %s1390_s14 }
  0x4a   : > { %1424 = vmatpush3.bf16.msra.mxu0 %v1575_v28  ;;  %v1626_v51 = vld [vmem:[#allocation2 + $0xe8] ss:$16 sps:$4 sm:$0xff]   ;;  %s1190_s13 = sshll.u32 %s233_s12, 4  ;;  %s1947_s23 = scalar_lea.sflag [#allocation4], %s231_s11  ;;  %s1940_s13 = int_to_ptr.vmem [resolvable:$true] %s1190_s13 }
  0x4b   : > { %1425 = vmatprep.subr.bf16.mxu0 %v1577_v30  ;;  %1402 = vmatpush3.bf16.msra.mxu1 %v1586_v39  ;;  %v1606_v30 = vld [vmem:[#allocation2 + $0x48] ss:$16 sps:$4 sm:$0xff]   ;;  %s1656_s25 = scalar_lea.vmem %s1940_s13, 512  ;;  %p2012_p9 = scmp.ne.s32.totalorder %s1997_s28, 0 }
  0x4c   : > { %1403 = vmatprep.subr.bf16.mxu1 %v1588_v41  ;;  %v1614_v39 = vld [vmem:[#allocation2 + $0x88] ss:$16 sps:$4 sm:$0xff]   ;;  %p1657_p6 = scmp.ne.s32.totalorder %s1940_s13, %s1656_s25  ;;  %s1731_s22 = smov [#allocation5]  }
  0x4d   : > { %v1616_v41 = vld [vmem:[#allocation2 + $0x1a8] ss:$16 sps:$4 sm:$0xff]   ;;  %s1660_s26 = sshll.u32 %s1731_s22, 4  ;;  %s1661_s26 = int_to_ptr.vmem [resolvable:$false] %s1660_s26 }
  0x4e   : > { %1426 = vmatpush3.bf16.msra.mxu0 %v1579_v32  ;;  %p1658_p10 = pnand %p1657_p6, %p2012_p9  ;;  %s1662_s6 = scalar_lea.vmem %s1661_s26, 1024 }
  0x4f   : > { %1427 = vmatprep.subr.bf16.mxu0 %v1581_v34  ;;  %1404 = vmatpush3.bf16.msra.mxu1 %v1590_v43  ;;  %v1609_v34 = vld [vmem:[#allocation2 + $0x16c] ss:$16 sps:$4 sm:$0xff]   ;;  %v1618_v43 = vld [vmem:[#allocation2 + $0xa8] ss:$16 sps:$4 sm:$0xff]   ;;  %p1663_p2 = scmp.lt.s32.totalorder %s1940_s13, %s1661_s26  ;;  %p1664_p3 = scmp.lt.s32.totalorder %s1662_s6, %s1656_s25 }
  0x50   : > { %1405 = vmatprep.subr.bf16.mxu1 %v1592_v45  ;;  %v1620_v45 = vld [vmem:[#allocation2 + $0x1c8] ss:$16 sps:$4 sm:$0xff]   ;;  %p1659_p12 = pneg %p1658_p10 }
  0x51   : > { %p1665_p4 = por %p1664_p3, %p1663_p2 }
  0x52   : > { %1428 = vmatpush3.bf16.msra.mxu0 %v1583_v36  ;;  %v1611_v36 = vld [vmem:[#allocation2 + $0x6c] ss:$16 sps:$4 sm:$0xff]  }
  0x53   : > { %1429 = vmatprep.subr.bf16.mxu0 %v1585_v38  ;;  %1406 = vmatpush3.bf16.msra.mxu1 %v1594_v47  ;;  %v1613_v38 = vld [vmem:[#allocation2 + $0x18c] ss:$16 sps:$4 sm:$0xff]   ;;  %v1622_v47 = vld [vmem:[#allocation2 + $0xc8] ss:$16 sps:$4 sm:$0xff]   ;;  %p1666_p7 = pnand %p1665_p4, %p1659_p12 }
  0x54   : > { %1447 = vmatprep.subr.bf16.mxu1 %v1596_v49  ;;  %v1624_v49 = vld [vmem:[#allocation2 + $0x1e8] ss:$16 sps:$4 sm:$0xff]  }
  0x56   : > { %1430 = vmatpush3.bf16.msra.mxu0 %v1587_v40  ;;  %v1615_v40 = vld [vmem:[#allocation2 + $0x8c] ss:$16 sps:$4 sm:$0xff]  }
  0x57   : > { %1431 = vmatprep.subr.bf16.mxu0 %v1589_v42  ;;  %v1617_v42 = vld [vmem:[#allocation2 + $0x1ac] ss:$16 sps:$4 sm:$0xff]  }
  0x5a   : > { %1432 = vmatpush3.bf16.msra.mxu0 %v1591_v44  ;;  %v1619_v44 = vld [vmem:[#allocation2 + $0xac] ss:$16 sps:$4 sm:$0xff]  }
  0x5b   : > { %1433 = vmatprep.subr.bf16.mxu0 %v1593_v46  ;;  %v1621_v46 = vld [vmem:[#allocation2 + $0x1cc] ss:$16 sps:$4 sm:$0xff]  }
  0x5e   : > { %1434 = vmatpush3.bf16.msra.mxu0 %v1595_v48  ;;  %v1623_v48 = vld [vmem:[#allocation2 + $0xcc] ss:$16 sps:$4 sm:$0xff]  }
  0x5f   : > { %1475 = vmatprep.subr.bf16.mxu0 %v1597_v50  ;;  %v1625_v50 = vld [vmem:[#allocation2 + $0x1ec] ss:$16 sps:$4 sm:$0xff]  }
 0x114   : > { %v309_v58 = vpop.f32.mrb[0].mxu0 }
 0x115   : > { %v340_v59 = vsub.f32 %v309_v58, %v333_v56  ;;  %v311_v60 = vpop.f32.mrb[1].mxu0 }
 0x116   : > { %v341_v61 = vsub.f32 %v311_v60, %v337_v57  ;;  %v313_v62 = vpop.f32.mrb[2].mxu0 }
 0x117   : > { %v348_v63 = vand.u32 2147483647, %v340_v59  ;;  %v342_v0 = vsub.f32 %v313_v62, %v333_v56  ;;  %v315_v1 = vpop.f32.mrb[3].mxu0 }
 0x118   : > { %v349_v2 = vand.u32 2147483647, %v341_v61  ;;  %v343_v3 = vsub.f32 %v315_v1, %v337_v57 }
 0x119   : > { %v350_v4 = vand.u32 2147483647, %v342_v0  ;;  %vm356_vm1 = vcmp.lt.f32.partialorder %v348_v63, 0.5 }
 0x11a   : > { %v351_v5 = vand.u32 2147483647, %v343_v3  ;;  %vm357_vm3 = vcmp.lt.f32.partialorder %v349_v2, 0.5 }
 0x11b   : > { %vm358_vm2 = vcmp.lt.f32.partialorder %v350_v4, 0.5 }
 0x11c   : > { %vm1862_vm4 = vmpackc.low %vm358_vm2, %vm356_vm1  ;;  %vm359_vm5 = vcmp.lt.f32.partialorder %v351_v5, 0.5  ;;  %v319_v8 = vpop.f32.mrb[4].mxu0 }
 0x11d   : > { %vm1866_vm6 = vmpackc.low %vm359_vm5, %vm357_vm3  ;;  %v344_v11 = vsub.f32 %v319_v8, %v333_v56  ;;  %v321_v12 = vpop.f32.mrb[5].mxu0 }
 0x11e   : > { %v345_v15 = vsub.f32 %v321_v12, %v337_v57  ;;  %v323_v16 = vpop.f32.mrb[6].mxu0  ;;  %1303 = vmatprep.mubr.msk.bf16.mxu1 %vm1866_vm6, %v1728_v17  ;;  %1328 = vmatprep.mubr.msk.bf16.mxu0 %vm1866_vm6, %v1728_v17 }
 0x11f   : > { %v352_v18 = vand.u32 2147483647, %v344_v11  ;;  %v346_v19 = vsub.f32 %v323_v16, %v333_v56  ;;  %v325_v20 = vpop.f32.mrb[7].mxu0  ;;  %1305 = vmatmul.mubr.msk.bf16.vlgmr.msra.gmra.mrb[0].mxu1 %vm1862_vm4, %v1728_v17  ;;  %1330 = vmatmul.mubr.msk.bf16.vlgmr.msra.gmra.mrb[8].mxu0 %vm1862_vm4, %v1728_v17 }
 0x120   : > { %v353_v22 = vand.u32 2147483647, %v345_v15  ;;  %v347_v23 = vsub.f32 %v325_v20, %v337_v57  ;;  %1448 = vmatpush3.bf16.msra.mxu1 %v1598_v6  ;;  %1476 = vmatpush3.bf16.msra.mxu0 %v1599_v9  ;;  %v1310_v57 = vld [vmem:[%s1992_s4 + $0x1] ss:$0 sm:$0xff] }
 0x121   : > { %vm360_vm7 = vcmp.lt.f32.partialorder %v352_v18, 0.5  ;;  %v354_v26 = vand.u32 2147483647, %v346_v19  ;;  %1449 = vmatprep.subr.bf16.mxu1 %v1600_v13  ;;  %1477 = vmatprep.subr.bf16.mxu0 %v1601_v14 }
 0x122   : > { %vm361_vm8 = vcmp.lt.f32.partialorder %v353_v22, 0.5  ;;  %v355_v28 = vand.u32 2147483647, %v347_v23 }
 0x123   : > { %vm362_vm9 = vcmp.lt.f32.partialorder %v354_v26, 0.5 }
 0x124   : > { %vm1882_vm10 = vmpackc.low %vm362_vm9, %vm360_vm7  ;;  %vm363_vm11 = vcmp.lt.f32.partialorder %v355_v28, 0.5  ;;  %1450 = vmatpush3.bf16.msra.mxu1 %v1602_v21  ;;  %1478 = vmatpush3.bf16.msra.mxu0 %v1603_v24 }
 0x125   : > { %vm1886_vm12 = vmpackc.low %vm363_vm11, %vm361_vm8  ;;  %1451 = vmatprep.subr.bf16.mxu1 %v1604_v25  ;;  %1479 = vmatprep.subr.bf16.mxu0 %v1605_v27 }
 0x126   : > { %1307 = vmatprep.mubr.msk.bf16.mxu1 %vm1886_vm12, %v1728_v17  ;;  %1332 = vmatprep.mubr.msk.bf16.mxu0 %vm1886_vm12, %v1728_v17 }
 0x127   : > { %1309 = vmatmul.mubr.msk.bf16.gmra.mrb[4].mxu1 %vm1882_vm10, %v1728_v17  ;;  %1334 = vmatmul.mubr.msk.bf16.gmra.mrb[12].mxu0 %vm1882_vm10, %v1728_v17 }
 0x128   : > { %1452 = vmatpush3.bf16.msra.mxu1 %v1606_v30  ;;  %1480 = vmatpush3.bf16.msra.mxu0 %v1607_v31 }
 0x129   : > { %1353 = vmatprep.mubr.msk.bf16.mxu1 %vm1866_vm6, %v1728_v17  ;;  %1378 = vmatprep.mubr.msk.bf16.mxu0 %vm1866_vm6, %v1728_v17 }
 0x12a   : > { %1453 = vmatprep.subr.bf16.mxu1 %v1608_v33  ;;  %1481 = vmatprep.subr.bf16.mxu0 %v1609_v34 }
 0x12c   : > { %1454 = vmatpush3.bf16.msra.mxu1 %v1610_v35  ;;  %1482 = vmatpush3.bf16.msra.mxu0 %v1611_v36 }
 0x12d   : > { %1455 = vmatprep.subr.bf16.mxu1 %v1612_v37  ;;  %1483 = vmatprep.subr.bf16.mxu0 %v1613_v38  ;;  %v1335_v37 = vld [vmem:[%s1992_s4 + $0x2] ss:$0 sm:$0xff] }
 0x130   : > { %1456 = vmatpush3.bf16.msra.mxu1 %v1614_v39  ;;  %1484 = vmatpush3.bf16.msra.mxu0 %v1615_v40  ;;  %v1360_v39 = vld [vmem:[%s1992_s4 + $0x3] ss:$0 sm:$0xff] }
 0x131   : > { %1457 = vmatprep.subr.bf16.mxu1 %v1616_v41  ;;  %1485 = vmatprep.subr.bf16.mxu0 %v1617_v42 }
 0x134   : > { %1458 = vmatpush3.bf16.msra.mxu1 %v1618_v43  ;;  %1486 = vmatpush3.bf16.msra.mxu0 %v1619_v44 }
 0x135   : > { %1459 = vmatprep.subr.bf16.mxu1 %v1620_v45  ;;  %1487 = vmatprep.subr.bf16.mxu0 %v1621_v46 }
 0x138   : > { %1460 = vmatpush3.bf16.msra.mxu1 %v1622_v47  ;;  %1488 = vmatpush3.bf16.msra.mxu0 %v1623_v48 }
 0x139   : > { %1461 = vmatprep.subr.bf16.mxu1 %v1624_v49  ;;  %1489 = vmatprep.subr.bf16.mxu0 %v1625_v50 }
 0x13c   : > { %1462 = vmatpush3.bf16.msra.mxu1 %v1626_v51  ;;  %1490 = vmatpush3.bf16.msra.mxu0 %v1627_v52 }
 0x13f   : > { %1355 = vmatmul.mubr.msk.bf16.vlgmr.msra.gmra.mrb[8].mxu1 %vm1862_vm4, %v1728_v17  ;;  %1380 = vmatmul.mubr.msk.bf16.vlgmr.msra.gmra.mrb[16].mxu0 %vm1862_vm4, %v1728_v17 }
 0x140   : > { %1357 = vmatprep.mubr.msk.bf16.mxu1 %vm1886_vm12, %v1728_v17  ;;  %1382 = vmatprep.mubr.msk.bf16.mxu0 %vm1886_vm12, %v1728_v17 }
 0x147   : > { %1359 = vmatmul.mubr.msk.bf16.gmra.mrb[12].mxu1 %vm1882_vm10, %v1728_v17  ;;  %1384 = vmatmul.mubr.msk.bf16.gmra.mrb[20].mxu0 %vm1882_vm10, %v1728_v17 }
 0x1f2   : > { %v1407_v53 = vpop.f32.mrb[0].mxu1  ;;  %v1435_v54 = vpop.f32.mrb[8].mxu0 }
 0x1f3   : > { %v1408_v56 = vpop.f32.mrb[1].mxu1  ;;  %v1436_v58 = vpop.f32.mrb[9].mxu0 }
 0x1f4   : > { %v1409_v59 = vadd.f32 %v1408_v56, %v1407_v53  ;;  %v1437_v60 = vadd.f32 %v1436_v58, %v1435_v54  ;;  %v1410_v61 = vpop.f32.mrb[2].mxu1  ;;  %v1438_v62 = vpop.f32.mrb[10].mxu0 }
 0x1f5   : > { %v1411_v63 = vpop.f32.mrb[3].mxu1  ;;  %v1439_v0 = vpop.f32.mrb[11].mxu0 }
 0x1f6   : > { %v554_v1 = vadd.f32 %v1409_v59, %v1285_v55  ;;  %v742_v2 = vadd.f32 %v1437_v60, %v1310_v57  ;;  %v1412_v3 = vadd.f32 %v1411_v63, %v1410_v61  ;;  %v1440_v4 = vadd.f32 %v1439_v0, %v1438_v62 }
 0x1f8   : > { %v568_v5 = vmax.f32 %v554_v1, 0.0  ;;  %v756_v6 = vmax.f32 %v742_v2, 0.0  ;;  %v557_v7 = vadd.f32 %v1412_v3, %v1285_v55  ;;  %v745_v8 = vadd.f32 %v1440_v4, %v1310_v57 }
 0x1fa   : > { %v760_v9 = vmax.f32 %v568_v5, %v756_v6  ;;  %v569_v10 = vmax.f32 %v557_v7, 0.0  ;;  %v757_v11 = vmax.f32 %v745_v8, 0.0  ;;  %v1413_v12 = vpop.f32.mrb[4].mxu1  ;;  %v1441_v13 = vpop.f32.mrb[12].mxu0 }
 0x1fb   : > { %v1414_v14 = vpop.f32.mrb[5].mxu1  ;;  %v1442_v15 = vpop.f32.mrb[13].mxu0 }
 0x1fc   : > { %v761_v16 = vmax.f32 %v569_v10, %v757_v11  ;;  %v1415_v17 = vadd.f32 %v1414_v14, %v1413_v12  ;;  %v1443_v18 = vadd.f32 %v1442_v15, %v1441_v13  ;;  %v1416_v19 = vpop.f32.mrb[6].mxu1  ;;  %v1444_v20 = vpop.f32.mrb[14].mxu0 }
 0x1fd   : > { %v1417_v21 = vpop.f32.mrb[7].mxu1  ;;  %v1445_v22 = vpop.f32.mrb[15].mxu0 }
 0x1fe   : > { %v562_v23 = vadd.f32 %v1415_v17, %v1285_v55  ;;  %v750_v24 = vadd.f32 %v1443_v18, %v1310_v57  ;;  %v1418_v25 = vadd.f32 %v1417_v21, %v1416_v19  ;;  %v1446_v26 = vadd.f32 %v1445_v22, %v1444_v20 }
 0x200   : > { %v570_v27 = vmax.f32 %v562_v23, 0.0  ;;  %v758_v28 = vmax.f32 %v750_v24, 0.0  ;;  %v565_v29 = vadd.f32 %v1418_v25, %v1285_v55  ;;  %v753_v30 = vadd.f32 %v1446_v26, %v1310_v57 }
 0x202   : > { %v762_v31 = vmax.f32 %v570_v27, %v758_v28  ;;  %v571_v32 = vmax.f32 %v565_v29, 0.0  ;;  %v759_v33 = vmax.f32 %v753_v30, 0.0 }
 0x204   : > { %v763_v34 = vmax.f32 %v571_v32, %v759_v33 }
 0x212   : > { %v1463_v35 = vpop.f32.mrb[8].mxu1  ;;  %v1491_v36 = vpop.f32.mrb[16].mxu0 }
 0x213   : > { %v1464_v38 = vpop.f32.mrb[9].mxu1  ;;  %v1492_v40 = vpop.f32.mrb[17].mxu0 }
 0x214   : > { %v1465_v41 = vadd.f32 %v1464_v38, %v1463_v35  ;;  %v1493_v42 = vadd.f32 %v1492_v40, %v1491_v36  ;;  %v1466_v43 = vpop.f32.mrb[10].mxu1  ;;  %v1494_v44 = vpop.f32.mrb[18].mxu0 }
 0x215   : > { %v1467_v45 = vpop.f32.mrb[11].mxu1  ;;  %v1495_v46 = vpop.f32.mrb[19].mxu0 }
 0x216   : > { %v934_v47 = vadd.f32 %v1465_v41, %v1335_v37  ;;  %v1126_v48 = vadd.f32 %v1493_v42, %v1360_v39  ;;  %v1468_v49 = vadd.f32 %v1467_v45, %v1466_v43  ;;  %v1496_v50 = vadd.f32 %v1495_v46, %v1494_v44 }
 0x218   : > { %v948_v51 = vmax.f32 %v934_v47, 0.0  ;;  %v937_v52 = vadd.f32 %v1468_v49, %v1335_v37  ;;  %v1129_v53 = vadd.f32 %v1496_v50, %v1360_v39  ;;  %v1140_v54 = vmax.f32 %v1126_v48, 0.0 }
 0x21a   : > { %v949_v55 = vmax.f32 %v937_v52, 0.0  ;;  %v1469_v56 = vpop.f32.mrb[12].mxu1  ;;  %v1497_v57 = vpop.f32.mrb[20].mxu0  ;;  %v952_v58 = vmax.f32 %v760_v9, %v948_v51  ;;  %v1141_v3 = vmax.f32 %v1129_v53, 0.0 }
 0x21b   : > { %v1470_v59 = vpop.f32.mrb[13].mxu1  ;;  %v1498_v60 = vpop.f32.mrb[21].mxu0 }
 0x21c   : > { %v953_v61 = vmax.f32 %v761_v16, %v949_v55  ;;  %v1471_v62 = vadd.f32 %v1470_v59, %v1469_v56  ;;  %v1499_v63 = vadd.f32 %v1498_v60, %v1497_v57  ;;  %v1472_v0 = vpop.f32.mrb[14].mxu1  ;;  %v1500_v1 = vpop.f32.mrb[22].mxu0  ;;  %v1144_v2 = vmax.f32 %v952_v58, %v1140_v54 }
 0x21d   : > { %v1473_v4 = vpop.f32.mrb[15].mxu1  ;;  %v1501_v5 = vpop.f32.mrb[23].mxu0 }
 0x21e   : > { %v942_v6 = vadd.f32 %v1471_v62, %v1335_v37  ;;  %v1134_v7 = vadd.f32 %v1499_v63, %v1360_v39  ;;  %v1474_v8 = vadd.f32 %v1473_v4, %v1472_v0  ;;  %v1502_v10 = vadd.f32 %v1501_v5, %v1500_v1  ;;  %1148 = vrot.lane.b32.xlu0 %v1144_v2, %s1729_s10 }
 0x21f   : > { %v1145_v11 = vmax.f32 %v953_v61, %v1141_v3 }
 0x220   : > { %v950_v12 = vmax.f32 %v942_v6, 0.0  ;;  %v945_v9 = vadd.f32 %v1474_v8, %v1335_v37  ;;  %v1137_v13 = vadd.f32 %v1502_v10, %v1360_v39  ;;  %v1142_v14 = vmax.f32 %v1134_v7, 0.0 }
 0x222   : > { %v951_v15 = vmax.f32 %v945_v9, 0.0  ;;  %1150 = vrot.lane.b32.xlu0 %v1145_v11, %s1729_s10  ;;  %v954_v16 = vmax.f32 %v762_v31, %v950_v12  ;;  %v1143_v18 = vmax.f32 %v1137_v13, 0.0 }
 0x224   : > { %v955_v17 = vmax.f32 %v763_v34, %v951_v15  ;;  %v1146_v19 = vmax.f32 %v954_v16, %v1142_v14 }
 0x226   : > { %1152 = vrot.lane.b32.xlu1 %v1146_v19, %s1729_s10  ;;  %v1147_v20 = vmax.f32 %v955_v17, %v1143_v18 }
 0x22a   : > { %1154 = vrot.lane.b32.xlu1 %v1147_v20, %s1729_s10 }
 0x290   : > { %v1149_v21 = vpop.permute.xlu0 %1148 }
 0x291   : > { %v1156_v22 = vmax.f32 %v1144_v2, %v1149_v21 }
 0x293   : > { %1160 = vrot.lane.b32.xlu0 %v1156_v22, %s1730_s7 }
 0x294   : > { %v1151_v23 = vpop.permute.xlu0 %1150 }
 0x295   : > { %v1157_v24 = vmax.f32 %v1145_v11, %v1151_v23 }
 0x297   : > { %1162 = vrot.lane.b32.xlu1 %v1157_v24, %s1730_s7 }
 0x298   : > { %v1153_v25 = vpop.permute.xlu1 %1152 }
 0x299   : > { %v1158_v26 = vmax.f32 %v1146_v19, %v1153_v25 }
 0x29b   : > { %1164 = vrot.lane.b32.xlu0 %v1158_v26, %s1730_s7 }
 0x29c   : > { %v1155_v27 = vpop.permute.xlu1 %1154 }
 0x29d   : > { %v1159_v28 = vmax.f32 %v1147_v20, %v1155_v27 }
 0x29f   : > { %1166 = vrot.lane.b32.xlu1 %v1159_v28, %s1730_s7 }
 0x305   : > { %v1161_v29 = vpop.permute.xlu0 %1160 }
 0x306   : > { %v1168_v30 = vmax.f32 %v1156_v22, %v1161_v29 }
 0x308   : > { %1172 = vst [vmem:[%s233_s12] sm:$0xff] %v1168_v30 }
 0x309   : > { %v1163_v31 = vpop.permute.xlu1 %1162 }
 0x30a   : > { %v1169_v32 = vmax.f32 %v1157_v24, %v1163_v31 }
 0x30c   : > { %1173 = vst [vmem:[%s233_s12 + $0x8] sm:$0xff] %v1169_v32 }
 0x30d   : > { %v1165_v33 = vpop.permute.xlu0 %1164 }
 0x30e   : > { %v1170_v34 = vmax.f32 %v1158_v26, %v1165_v33 }
 0x310   : > { %1174 = vst [vmem:[%s233_s12 + $0x10] sm:$0xff] %v1170_v34 }
 0x311   : > { %v1167_v35 = vpop.permute.xlu1 %1166 }
 0x312   : > { %v1171_v36 = vmax.f32 %v1159_v28, %v1167_v35 }
 0x314   : > { %1175 = vst [vmem:[%s233_s12 + $0x18] sm:$0xff] %v1171_v36 }
 0x315   : > { %1669 = shalt.err (!%p1666_p7)
}
 0x316   : > { %s1670_s8 = scalar_lea.hbm %s1945_s17, 512  ;;  %s1674_s7 = scalar_lea.hbm %s1993_s5, 1024 }
 0x317   : > { %p1671_p8 = scmp.ne.s32.totalorder %s1945_s17, %s1670_s8  ;;  %p1675_p1 = scmp.lt.u32.totalorder %s1945_s17, %s1993_s5 }
 0x318   : > { %p1676_p0 = scmp.lt.u32.totalorder %s1674_s7, %s1670_s8  ;;  %p1678_p6 = scmp.lt.u32.totalorder %s1670_s8, %s1945_s17 }
 0x319   : > { %p1672_p11 = pnand %p1671_p8, %p2012_p9 }
 0x31a   : > { %p1677_p5 = por %p1676_p0, %p1675_p1 }
 0x31b   : > { %p1673_p13 = pneg %p1672_p11 }
 0x31c   : > { %p1679_p10 = por %p1678_p6, %p1677_p5 }
 0x31e   : > { %p1680_p12 = pnand %p1679_p10, %p1673_p13 }
 0x320   : > { %1683 = shalt.err (!%p1680_p12)
}
 0x321   : > { %s1732_s12 = smov 128   ;;  %s1733_s14 = smov 8  }
 0x322   : > { %1507 = dma.vmem_to_hbm [thread:$0]  (%p2012_p9), %s1940_s13, 512, %s1945_s17, %s1947_s23, %s1732_s12, %s1732_s12, %s1733_s14  }
 0x323 PF: > { %p1519_p2 = scmp.ge.s32.totalorder %s1722_s21, 2  ;;  %s1205_s15 = sand.u32 1, %s1710_s18  }
 0x324   : > { %p2013_p3 = scmp.ne.s32.totalorder %s1998_s29, 0  ;;  %s1206_s16 = scalar_lea.sflag [#allocation4], %s1205_s15 }
 0x326   : > { %p1514_p4 = pnand %p1519_p2, %p2013_p3 }
 0x328   : > { %1705 = dma.done.wait (!%p1514_p4), %s1206_s16, 512  }
 0x329   : > { %1707 = vsyncadd (!%p1514_p4), %s1206_s16, 4294966784  ;;  %p16_p7 = scmp.ge.s32.totalorder %s1789_s24, 4   ;;  %s2014_s18 = smov %s1714_s19 }
 0x32a   : > { %s2015_s19 = smov %s1718_s20  ;;  %s2016_s20 = smov %s1800_s27 }
 0x32b   : > { %s2017_s21 = smov %s1789_s24  ;;  %18 = sbr.rel (!%p16_p7) target bundleno = 4 (0x4), region = 80 }
 0x332   :  { %1211 = vsyncpa [#allocation3], 1 }
 0x333   :  { %1213 = vsyncpa [#allocation3 + $0x1], 1 }
 0x334   :  { %1214 = vsyncpa [#allocation4], 1 }
 0x335   :  { %1216 = vsyncpa [#allocation4 + $0x1], 1 }

</bundles_post_ra>
